<compile_context>
chip_gen: v7x
topology: tpu7x:2x2x1
jax: 0.10.0
libtpu: 0.0.40
codegen_flags: <defaults>
</compile_context>

<pallas_src>
import functools

import numpy as np
import jax
import jax.numpy as jnp
from jax.experimental import pallas as pl
from jax.experimental.pallas import tpu as pltpu


# --------------------------------------------------------------------------- #
# Kernel: one (TO, L, C) tile -> (TO, L, C) tile of axial multi-head attention #
# --------------------------------------------------------------------------- #
def _axial_mha_kernel(x_ref, wqkv_ref, wo_ref, bo_ref, o_ref, *, n_head):
    TO, L, C = x_ref.shape
    dh = C // n_head

    # ---- fused QKV projection: ONE (TO*L, C) @ (C, 3C) bf16 matmul (f32 acc).
    x2 = x_ref[...].reshape(TO * L, C).astype(jnp.bfloat16)
    qkv = jnp.dot(x2, wqkv_ref[...], preferred_element_type=jnp.float32)
    qkv = qkv.reshape(TO, L, 3 * C)

    # ---- stack heads along the leading batch dim: (n_head*TO, L, dh).
    # Lane slicing + leading-dim concat only (both known-good Mosaic ops);
    # this lets scores / softmax / PV run as single batched ops.
    def heads(base):
        return jnp.concatenate(
            [qkv[:, :, base + h * dh:base + (h + 1) * dh] for h in range(n_head)],
            axis=0,
        ).astype(jnp.bfloat16)

    qs = heads(0)          # scale 1/sqrt(dh) already folded into wq
    ks = heads(C)
    vs = heads(2 * C)

    # ---- attention: single batched einsums, f32 accumulation, f32 softmax.
    s = jnp.einsum("bld,bmd->blm", qs, ks, preferred_element_type=jnp.float32)
    s = s - jnp.max(s, axis=-1, keepdims=True)
    p = jnp.exp(s)
    inv = pl.reciprocal(jnp.sum(p, axis=-1, keepdims=True), approx=True)  # EUP
    attn = (p * inv).astype(jnp.bfloat16)
    ctx = jnp.einsum("blm,bmd->bld", attn, vs,
                     preferred_element_type=jnp.float32)   # (n_head*TO, L, dh)

    # ---- output projection: one batched matmul over heads + head-sum.
    ctx = ctx.reshape(n_head, TO * L, dh).astype(jnp.bfloat16)
    y = jnp.einsum("hnd,hdc->hnc", ctx, wo_ref[...],
                   preferred_element_type=jnp.float32).sum(axis=0)
    y = y + bo_ref[...]                                    # (1, C) bias
    o_ref[...] = y.reshape(TO, L, C).astype(o_ref.dtype)
    # TODO(synk): attn_dropout (training-only, default 0.0) is not implemented.


# --------------------------------------------------------------------------- #
# pallas_call wrapper for one axis                                             #
# --------------------------------------------------------------------------- #
def _pick_o_tile(O, L, C, n_head, budget_bytes=8 * 1024 * 1024):
    """Largest divisor of O whose per-step f32 working set fits the budget,
    preferring >= 2 grid steps along O so the pipeline (and v7x's two
    TensorCores) has something to prefetch."""
    def step_bytes(to):
        return 24 * to * L * C * 4 + 4 * n_head * to * L * L * 4

    to = 1
    for cand in range(O, 0, -1):
        if O % cand == 0 and step_bytes(cand) <= budget_bytes:
            to = cand
            break
    if to == O and O > 1:
        for cand in range(O // 2, 0, -1):
            if O % cand == 0:
                to = cand
                break
    return to


def _axial_mha(x, wqkv, wo3, bo, n_head):
    """x: (B, O, L, C) -> (B, O, L, C); attention over L per (B, O) row."""
    B, O, L, C = x.shape
    dh = C // n_head
    TO = _pick_o_tile(O, L, C, n_head)
    kernel = functools.partial(_axial_mha_kernel, n_head=n_head)
    return pl.pallas_call(
        kernel,
        out_shape=jax.ShapeDtypeStruct((B, O, L, C), x.dtype),
        grid=(B, O // TO),
        in_specs=[
            pl.BlockSpec((None, TO, L, C), lambda b, o: (b, o, 0, 0)),   # x tile
            # Constant index maps: weights/bias are fetched once and stay
            # resident in VMEM across all grid steps.
            pl.BlockSpec((C, 3 * C), lambda b, o: (0, 0)),               # wqkv
            pl.BlockSpec((n_head, dh, C), lambda b, o: (0, 0, 0)),       # wo
            pl.BlockSpec((1, C), lambda b, o: (0, 0)),                   # bo
        ],
        out_specs=pl.BlockSpec((None, TO, L, C), lambda b, o: (b, o, 0, 0)),
        compiler_params=pltpu.CompilerParams(
            dimension_semantics=("parallel", "parallel"),
            vmem_limit_bytes=32 * 1024 * 1024,
        ),
    )(x, wqkv, wo3, bo)


# --------------------------------------------------------------------------- #
# AxialAttentionBlock forward                                                  #
# --------------------------------------------------------------------------- #
def prepare_params(params, n_head):
    """Fold the attention scale into wq, fuse wq|wk|wv, pre-split wo per head,
    and cast matmul weights to bf16 (one-time, wrapper-side)."""
    prepared = []
    for wq, wk, wv, wo, bo in params:
        C = wq.shape[0]
        dh = C // n_head
        wqkv = jnp.concatenate([wq * (dh ** -0.5), wk, wv], axis=1)
        prepared.append((
            wqkv.astype(jnp.bfloat16),              # (C, 3C)
            wo.reshape(n_head, dh, C).astype(jnp.bfloat16),
            bo.astype(jnp.float32),                 # (1, C)
        ))
    return prepared


def axial_attention_block(x, params, n_head):
    """x: (B, C, d1, ..., dn) (PyTorch channel-first). params[d] = (wq, wk, wv,
    wo, bo) of the d-th MultiHeadAttention (y = x @ W convention)."""
    B, C = x.shape[0], x.shape[1]
    spatial = x.shape[2:]
    n_dims = len(spatial)
    prepared = prepare_params(params, n_head)

    h = jnp.moveaxis(x, 1, -1)                      # channels-last
    out = None
    for d in range(n_dims):
        wqkv, wo3, bo = prepared[d]
        hd = jnp.moveaxis(h, 1 + d, -2)             # identity for the last axis
        other = hd.shape[1:-2]
        L = hd.shape[-2]
        O = int(np.prod(other)) if other else 1
        od = _axial_mha(hd.reshape(B, O, L, C), wqkv, wo3, bo, n_head)
        od = jnp.moveaxis(od.reshape((B,) + tuple(other) + (L, C)), -2, 1 + d)
        out = od if out is None else out + od       # sum over axes (as in torch)
    return jnp.moveaxis(out, -1, 1)                 # back to (B, C, d1, ..., dn)


# ---------------- pure-JAX f32 reference (mirrors the PyTorch code) ----------
def reference_block(x, params, n_head):
    HI = jax.lax.Precision.HIGHEST
    B, C = x.shape[0], x.shape[1]
    n_dims = x.ndim - 2
    dh = C // n_head
    h = jnp.moveaxis(x, 1, -1)
    out = jnp.zeros_like(h)
    for d in range(n_dims):
        wq, wk, wv, wo, bo = params[d]
        q = jnp.einsum("...c,cd->...d", h, wq, precision=HI)
        k = jnp.einsum("...c,cd->...d", h, wk, precision=HI)
        v = jnp.einsum("...c,cd->...d", h, wv, precision=HI)

        def split(t):  # split_multihead: (..., C) -> (B, nh, d1..dn, dh)
            t = t.reshape(t.shape[:-1] + (n_head, dh))
            return jnp.moveaxis(t, -2, 1)

        qh, kh, vh = split(q), split(k), split(v)
        ax = 2 + d                                   # AxialAttention.axial_dim
        qh = jnp.moveaxis(qh, ax, -2)
        kh = jnp.moveaxis(kh, ax, -2)
        vh = jnp.moveaxis(vh, ax, -2)
        s = jnp.einsum("...ld,...md->...lm", qh, kh, precision=HI)
        s = s / jnp.sqrt(jnp.float32(dh))
        a = jax.nn.softmax(s, axis=-1)
        o = jnp.einsum("...lm,...md->...ld", a, vh, precision=HI)
        o = jnp.moveaxis(o, -2, ax)
        o = jnp.moveaxis(o, 1, -2)                   # merge_multihead
        o = o.reshape(o.shape[:-2] + (C,))
        out = out + jnp.einsum("...c,cd->...d", o, wo, precision=HI) + bo[0]
    return jnp.moveaxis(out, -1, 1)


def init_params(key, n_dims, qkv_dim):
    scale = qkv_dim ** -0.5
    params = []
    for _ in range(n_dims):
        key, k0, k1, k2, k3, k4 = jax.random.split(key, 6)
        wq = scale * jax.random.normal(k0, (qkv_dim, qkv_dim), jnp.float32)
        wk = scale * jax.random.normal(k1, (qkv_dim, qkv_dim), jnp.float32)
        wv = scale * jax.random.normal(k2, (qkv_dim, qkv_dim), jnp.float32)
        wo = scale * jax.random.normal(k3, (qkv_dim, qkv_dim), jnp.float32)
        bo = 0.02 * jax.random.normal(k4, (1, qkv_dim), jnp.float32)
        params.append((wq, wk, wv, wo, bo))
    return params


if __name__ == "__main__":
    key = jax.random.PRNGKey(0)
    kx, kp = jax.random.split(key)

    # AxialAttentionBlock(n_dims=2, qkv_dim=32, n_head=4) on a (2, 32, 8, 8) input.
    B, C, H, W = 2, 32, 8, 8
    n_head = 4
    x = jax.random.normal(kx, (B, C, H, W), jnp.float32)
    params = init_params(kp, n_dims=2, qkv_dim=C)

    fwd = jax.jit(lambda t: axial_attention_block(t, params, n_head))
    out = jax.block_until_ready(fwd(x))

    ref = reference_block(x, params, n_head)
    assert out.shape == x.shape
    # bf16 matmul inputs (f32 accumulation) + approx reciprocal -> looser
    # tolerance than the pure-f32 reference; real bugs would be O(1) off.
    np.testing.assert_allclose(np.asarray(out), np.asarray(ref),
                               rtol=1e-1, atol=5e-2)
    print("KERNEL_OK")
</pallas_src>

<mosaic_0001>
module attributes {stable_mosaic.version = 11 : i64} {
  func.func @_axial_mha_kernel(%arg0: i32, %arg1: i32, %arg2: memref<1x4x8x32xf32, #tpu.memory_space<vmem>>, %arg3: memref<32x96xbf16, #tpu.memory_space<vmem>>, %arg4: memref<4x8x32xbf16, #tpu.memory_space<vmem>>, %arg5: memref<1x32xf32, #tpu.memory_space<vmem>>, %arg6: memref<1x4x8x32xf32, #tpu.memory_space<vmem>>) attributes {dimension_semantics = [#tpu.dimension_semantics<parallel>, #tpu.dimension_semantics<parallel>], iteration_bounds = array<i64: 2, 2>, scalar_prefetch = 0 : i64, scratch_operands = 0 : i64, tpu.core_type = #tpu.core_type<tc>, window_params = [{transform_indices = @transform_0, window_bounds = array<i64: 1, 4, 8, 32>}, {pipeline_mode = #tpu.pipeline_mode<synchronous>, transform_indices = @transform_1, window_bounds = array<i64: 32, 96>}, {pipeline_mode = #tpu.pipeline_mode<synchronous>, transform_indices = @transform_2, window_bounds = array<i64: 4, 8, 32>}, {pipeline_mode = #tpu.pipeline_mode<synchronous>, transform_indices = @transform_3, window_bounds = array<i64: 1, 32>}, {transform_indices = @transform_4, window_bounds = array<i64: 1, 4, 8, 32>}]} {
    %c0 = arith.constant 0 : index
    %c0_0 = arith.constant 0 : index
    %c0_1 = arith.constant 0 : index
    %c0_2 = arith.constant 0 : index
    %0 = vector.load %arg2[%c0, %c0_0, %c0_1, %c0_2] : memref<1x4x8x32xf32, #tpu.memory_space<vmem>>, vector<1x4x8x32xf32>
    %1 = vector.shape_cast %0 : vector<1x4x8x32xf32> to vector<4x8x32xf32>
    %2 = vector.shape_cast %1 : vector<4x8x32xf32> to vector<32x32xf32>
    %3 = arith.truncf %2 : vector<32x32xf32> to vector<32x32xbf16>
    %c0_3 = arith.constant 0 : index
    %c0_4 = arith.constant 0 : index
    %4 = vector.load %arg3[%c0_3, %c0_4] : memref<32x96xbf16, #tpu.memory_space<vmem>>, vector<32x96xbf16>
    %cst = arith.constant dense<0.000000e+00> : vector<32x96xf32>
    %5 = tpu.matmul %3, %4, %cst {dimension_numbers = #tpu.dot_dimension_numbers<[1], [0], [0], [1], [0, 0, 1, 1], [], []>} : vector<32x32xbf16>, vector<32x96xbf16>, vector<32x96xf32> -> vector<32x96xf32>
    %6 = vector.shape_cast %5 : vector<32x96xf32> to vector<4x8x96xf32>
    %7 = vector.extract_strided_slice %6 {offsets = [0, 0, 0], sizes = [4, 8, 8], strides = [1, 1, 1]} : vector<4x8x96xf32> to vector<4x8x8xf32>
    %8 = vector.extract_strided_slice %6 {offsets = [0, 0, 8], sizes = [4, 8, 8], strides = [1, 1, 1]} : vector<4x8x96xf32> to vector<4x8x8xf32>
    %9 = vector.extract_strided_slice %6 {offsets = [0, 0, 16], sizes = [4, 8, 8], strides = [1, 1, 1]} : vector<4x8x96xf32> to vector<4x8x8xf32>
    %10 = vector.extract_strided_slice %6 {offsets = [0, 0, 24], sizes = [4, 8, 8], strides = [1, 1, 1]} : vector<4x8x96xf32> to vector<4x8x8xf32>
    %11 = tpu.concatenate %7, %8, %9, %10 in 0 : vector<4x8x8xf32>, vector<4x8x8xf32>, vector<4x8x8xf32>, vector<4x8x8xf32> -> vector<16x8x8xf32>
    %12 = arith.truncf %11 : vector<16x8x8xf32> to vector<16x8x8xbf16>
    %13 = vector.extract_strided_slice %6 {offsets = [0, 0, 32], sizes = [4, 8, 8], strides = [1, 1, 1]} : vector<4x8x96xf32> to vector<4x8x8xf32>
    %14 = vector.extract_strided_slice %6 {offsets = [0, 0, 40], sizes = [4, 8, 8], strides = [1, 1, 1]} : vector<4x8x96xf32> to vector<4x8x8xf32>
    %15 = vector.extract_strided_slice %6 {offsets = [0, 0, 48], sizes = [4, 8, 8], strides = [1, 1, 1]} : vector<4x8x96xf32> to vector<4x8x8xf32>
    %16 = vector.extract_strided_slice %6 {offsets = [0, 0, 56], sizes = [4, 8, 8], strides = [1, 1, 1]} : vector<4x8x96xf32> to vector<4x8x8xf32>
    %17 = tpu.concatenate %13, %14, %15, %16 in 0 : vector<4x8x8xf32>, vector<4x8x8xf32>, vector<4x8x8xf32>, vector<4x8x8xf32> -> vector<16x8x8xf32>
    %18 = arith.truncf %17 : vector<16x8x8xf32> to vector<16x8x8xbf16>
    %19 = vector.extract_strided_slice %6 {offsets = [0, 0, 64], sizes = [4, 8, 8], strides = [1, 1, 1]} : vector<4x8x96xf32> to vector<4x8x8xf32>
    %20 = vector.extract_strided_slice %6 {offsets = [0, 0, 72], sizes = [4, 8, 8], strides = [1, 1, 1]} : vector<4x8x96xf32> to vector<4x8x8xf32>
    %21 = vector.extract_strided_slice %6 {offsets = [0, 0, 80], sizes = [4, 8, 8], strides = [1, 1, 1]} : vector<4x8x96xf32> to vector<4x8x8xf32>
    %22 = vector.extract_strided_slice %6 {offsets = [0, 0, 88], sizes = [4, 8, 8], strides = [1, 1, 1]} : vector<4x8x96xf32> to vector<4x8x8xf32>
    %23 = tpu.concatenate %19, %20, %21, %22 in 0 : vector<4x8x8xf32>, vector<4x8x8xf32>, vector<4x8x8xf32>, vector<4x8x8xf32> -> vector<16x8x8xf32>
    %24 = arith.truncf %23 : vector<16x8x8xf32> to vector<16x8x8xbf16>
    "tpu.trace_start"() <{level = 10 : i32, message = "bld,bmd->blm"}> : () -> ()
    %cst_5 = arith.constant dense<0.000000e+00> : vector<16x8x8xf32>
    %25 = tpu.matmul %12, %18, %cst_5 {dimension_numbers = #tpu.dot_dimension_numbers<[2], [2], [1], [1], [0, 0, 0, 1, 1, 1], [0], [0]>} : vector<16x8x8xbf16>, vector<16x8x8xbf16>, vector<16x8x8xf32> -> vector<16x8x8xf32>
    "tpu.trace_stop"() : () -> ()
    %cst_6 = arith.constant dense<0xFF800000> : vector<16x8xf32>
    %26 = vector.multi_reduction <maximumf>, %25, %cst_6 [2] : vector<16x8x8xf32> to vector<16x8xf32>
    %27 = vector.shape_cast %26 : vector<16x8xf32> to vector<16x8x1xf32>
    %28 = vector.broadcast %27 : vector<16x8x1xf32> to vector<16x8x8xf32>
    %29 = arith.subf %25, %28 : vector<16x8x8xf32>
    %30 = math.exp %29 : vector<16x8x8xf32>
    %cst_7 = arith.constant dense<0.000000e+00> : vector<16x8xf32>
    %31 = vector.multi_reduction <add>, %30, %cst_7 [2] : vector<16x8x8xf32> to vector<16x8xf32>
    %32 = vector.shape_cast %31 : vector<16x8xf32> to vector<16x8x1xf32>
    %33 = tpu.reciprocal %32 {approx = true} : vector<16x8x1xf32> -> vector<16x8x1xf32>
    %34 = vector.broadcast %33 : vector<16x8x1xf32> to vector<16x8x8xf32>
    %35 = arith.mulf %30, %34 : vector<16x8x8xf32>
    %36 = arith.truncf %35 : vector<16x8x8xf32> to vector<16x8x8xbf16>
    "tpu.trace_start"() <{level = 10 : i32, message = "blm,bmd->bld"}> : () -> ()
    %cst_8 = arith.constant dense<0.000000e+00> : vector<16x8x8xf32>
    %37 = tpu.matmul %36, %24, %cst_8 {dimension_numbers = #tpu.dot_dimension_numbers<[2], [1], [1], [2], [0, 0, 0, 1, 1, 2], [0], [0]>} : vector<16x8x8xbf16>, vector<16x8x8xbf16>, vector<16x8x8xf32> -> vector<16x8x8xf32>
    "tpu.trace_stop"() : () -> ()
    %38 = vector.shape_cast %37 : vector<16x8x8xf32> to vector<4x32x8xf32>
    %39 = arith.truncf %38 : vector<4x32x8xf32> to vector<4x32x8xbf16>
    %c0_9 = arith.constant 0 : index
    %c0_10 = arith.constant 0 : index
    %c0_11 = arith.constant 0 : index
    %40 = vector.load %arg4[%c0_9, %c0_10, %c0_11] : memref<4x8x32xbf16, #tpu.memory_space<vmem>>, vector<4x8x32xbf16>
    "tpu.trace_start"() <{level = 10 : i32, message = "hnd,hdc->hnc"}> : () -> ()
    %cst_12 = arith.constant dense<0.000000e+00> : vector<4x32x32xf32>
    %41 = tpu.matmul %39, %40, %cst_12 {dimension_numbers = #tpu.dot_dimension_numbers<[2], [1], [1], [2], [0, 0, 0, 1, 1, 2], [0], [0]>} : vector<4x32x8xbf16>, vector<4x8x32xbf16>, vector<4x32x32xf32> -> vector<4x32x32xf32>
    "tpu.trace_stop"() : () -> ()
    %cst_13 = arith.constant dense<0.000000e+00> : vector<32x32xf32>
    %42 = vector.multi_reduction <add>, %41, %cst_13 [0] : vector<4x32x32xf32> to vector<32x32xf32>
    %c0_14 = arith.constant 0 : index
    %c0_15 = arith.constant 0 : index
    %43 = vector.load %arg5[%c0_14, %c0_15] : memref<1x32xf32, #tpu.memory_space<vmem>>, vector<1x32xf32>
    %44 = vector.broadcast %43 : vector<1x32xf32> to vector<32x32xf32>
    %45 = arith.addf %42, %44 : vector<32x32xf32>
    %46 = vector.shape_cast %45 : vector<32x32xf32> to vector<4x8x32xf32>
    %c0_16 = arith.constant 0 : index
    %c0_17 = arith.constant 0 : index
    %c0_18 = arith.constant 0 : index
    %c0_19 = arith.constant 0 : index
    %47 = vector.load %arg6[%c0_16, %c0_17, %c0_18, %c0_19] : memref<1x4x8x32xf32, #tpu.memory_space<vmem>>, vector<1x4x8x32xf32>
    %48 = vector.shape_cast %47 : vector<1x4x8x32xf32> to vector<4x8x32xf32>
    %49 = vector.shape_cast %46 : vector<4x8x32xf32> to vector<1x4x8x32xf32>
    tpu.vector_store %arg6[%c0_16, %c0_17, %c0_18, %c0_19], %49 {strides = array<i32>} : memref<1x4x8x32xf32, #tpu.memory_space<vmem>>, vector<1x4x8x32xf32>,
    return
  }
  func.func @transform_0(%arg0: i32, %arg1: i32) -> (i32, i32, i32, i32) {
    %c0_i32 = arith.constant 0 : i32
    %c0_i32_0 = arith.constant 0 : i32
    %c0_i32_1 = arith.constant 0 : i32
    return %arg0, %arg1, %c0_i32, %c0_i32_0 : i32, i32, i32, i32
  }
  func.func @transform_1(%arg0: i32, %arg1: i32) -> (i32, i32) {
    %c0_i32 = arith.constant 0 : i32
    %c0_i32_0 = arith.constant 0 : i32
    %c0_i32_1 = arith.constant 0 : i32
    return %c0_i32, %c0_i32_0 : i32, i32
  }
  func.func @transform_2(%arg0: i32, %arg1: i32) -> (i32, i32, i32) {
    %c0_i32 = arith.constant 0 : i32
    %c0_i32_0 = arith.constant 0 : i32
    %c0_i32_1 = arith.constant 0 : i32
    %c0_i32_2 = arith.constant 0 : i32
    return %c0_i32, %c0_i32_0, %c0_i32_1 : i32, i32, i32
  }
  func.func @transform_3(%arg0: i32, %arg1: i32) -> (i32, i32) {
    %c0_i32 = arith.constant 0 : i32
    %c0_i32_0 = arith.constant 0 : i32
    %c0_i32_1 = arith.constant 0 : i32
    return %c0_i32, %c0_i32_0 : i32, i32
  }
  func.func @transform_4(%arg0: i32, %arg1: i32) -> (i32, i32, i32, i32) {
    %c0_i32 = arith.constant 0 : i32
    %c0_i32_0 = arith.constant 0 : i32
    %c0_i32_1 = arith.constant 0 : i32
    return %arg0, %arg1, %c0_i32, %c0_i32_0 : i32, i32, i32, i32
  }
}

</mosaic_0001>

<bundles_post_ra>
// kernel: _lambda_.2
= control target key start
LH: loop header
LB: loop body
LE: loop exit
PB: predicated region body
PF: predicated region fallthrough
CT: control target
= control target key end

     0   :  { %s3076_s15 = smov 0   ;;  %s3078_s16 = smov 0   ;;  %s3655_s0 = inlined_call_operand.vmem [shape: f32[2,8,8,32], index: 0, kind: input, shape index: {}]   ;;  %s3656_s1 = inlined_call_operand.vmem [shape: bf16[32,96], index: 1, kind: input, shape index: {}]   ;;  %s3657_s2 = inlined_call_operand.vmem [shape: bf16[4,8,32], index: 2, kind: input, shape index: {}]   ;;  %s3658_s3 = inlined_call_operand.vmem [shape: f32[1,32], index: 3, kind: input, shape index: {}]   ;;  %s3659_s4 = inlined_call_operand.vmem [shape: f32[2,8,8,32], index: 4, kind: output, shape index: {}]  }
   0x1   :  { %s3080_s17 = smov 0   ;;  %s3082_s18 = smov 0  }
   0x2   :  { %s3084_s19 = smov 0  }
   0x3 LB: > { %s23_s20 = sadd.s32 1, %s3034_s17  ;;  %s26_s21 = sadd.s32 1, %s3038_s18  ;;  %s3042_s19 = sphi %s3084_s19, %s14_s19   ;;  %s3038_s18 = sphi %s3082_s18, %s3663_s18   ;;  %s3034_s17 = sphi %s3080_s17, %s3662_s17   ;;  %s3030_s16 = sphi %s3078_s16, %s3661_s16   ;;  %s3026_s15 = sphi %s3076_s15, %s3660_s15  }
   0x4   : > { %p24_p0 = scmp.ge.s32.totalorder %s23_s20, 2  ;;  %p2499_p1 = scmp.ge.s32.totalorder %s3042_s19, 1 }
   0x5   : > { %p183_p2 = scmp.lt.s32.totalorder %s3042_s19, 5 }
   0x6   : > { %s3665_s20 = smov (%p24_p0, %s23_s20), 0  ;;  %s3667_s21 = smov (!%p24_p0, %s26_s21), %s3038_s18 }
   0x7   : > { %p184_p3 = pnand %p2499_p1, %p183_p2  ;;  %p28_p4 = scmp.ge.s32.totalorder %s3667_s21, 2 }
   0x8   : > { %v2938_v0 = vld [vmem:[%s3656_s1] sm:$0xff] (!%p184_p3)   ;;  %s2500_s24 = sshll.u32 (!%p184_p3), %s3026_s15, 2  ;;  %v2939_v1 = vld [vmem:[%s3656_s1 + $0x8] sm:$0xff] (!%p184_p3)   ;;  %p218_p5 = scmp.lt.s32.totalorder (!%p184_p3), %s3030_s16, 1  ;;  %vm260_vm0 = vcmask (!%p184_p3), 261120   ;;  %v3046_v14 = vmov (!%p184_p3), 0.0  }
   0x9   : > { %s3669_s21 = smov (%p28_p4, %s3667_s21), 0  ;;  %187 = sbr.rel (%p184_p3) target bundleno = 1533 (0x5fd), region = 36 }
   0xa   : > { %2633 = vmatprep.subr.bf16.mxu0 (!%p184_p3), %v2938_v0  ;;  %p220_p6 = scmp.lt.s32.totalorder (!%p184_p3), %s2500_s24, 7  ;;  %s3044_s7 = smov (!%p184_p3), 112   ;;  %2641 = vmatprep.subr.bf16.mxu1 (!%p184_p3), %v3046_v14  ;;  %vm3047_vm1 = vmmov (!%p184_p3), 0   ;;  %vm375_vm2 = vcmask (!%p184_p3), 64512   ;;  %vm1354_vm3 = vcmask (!%p184_p3), 1043456  }
   0xb   : > { %2634 = vmatpush3.bf16.msra.mxu0 (!%p184_p3), %v2938_v0  ;;  %s3045_s8 = smov (!%p184_p3), 120   ;;  %2643 = vmatprep.mubr.msk.bf16.mxu1 (!%p184_p3), %vm3047_vm1, %v3046_v14  ;;  %s3048_s9 = smov (!%p184_p3), 104  }
   0xc   : > { %2635 = vmatprep.subr.bf16.mxu0 (!%p184_p3), %v2939_v1  ;;  %s3049_s10 = smov (!%p184_p3), 96   ;;  %s3050_s11 = smov (!%p184_p3), 64  }
   0xf   : > { %2636 = vmatpush3.bf16.msra.mxu0 (!%p184_p3), %v2939_v1 }
  0x10   : > { %s3671_s16 = smov (!%p218_p5, %s3030_s16), 1  ;;  %s3673_s24 = smov (!%p220_p6, %s2500_s24), 7  ;;  %2647 = vmatprep.subr.bf16.mxu0 %v3046_v14 }
  0x11   : > { %s2501_s27 = sshll.u32 %s3671_s16, 3 }
  0x12   : > { %s3112_s28 = sadd.s32 %s2501_s27, %s3673_s24 }
  0x13   : > { %s2502_s29 = sshll.u32 %s3112_s28, 3 }
  0x14   : > { %s225_s6 = scalar_lea.vmem %s3655_s0, %s2502_s29  ;;  %s235_s5 = scalar_lea.vmem %s3659_s4, %s2502_s29 }
  0x15   : > { %v238_v2 = vld [vmem:[%s225_s6] sm:$0xff]  ;;  %v239_v3 = vld [vmem:[%s225_s6 + $0x8] sm:$0xff]  ;;  %v240_v4 = vld [vmem:[%s225_s6 + $0x10] sm:$0xff] }
  0x16   : > { %v242_v5 = vpack.c.bf16 %v239_v3, %v238_v2  ;;  %v241_v6 = vld [vmem:[%s225_s6 + $0x18] sm:$0xff] }
  0x17   : > { %v243_v7 = vpack.c.bf16 %v241_v6, %v240_v4 }
  0x18   : > { %2637 = vmatprep.mubr.msk.bf16.mxu0 %vm260_vm0, %v242_v5 }
  0x19   : > { %2638 = vmatmul.mubr.msk.bf16.vlgmr.msra.gmra.mrb[0].mxu0 %vm260_vm0, %v243_v7 }
  0x1a   : > { %2649 = vmatprep.mubr.msk.bf16.mxu0 %vm3047_vm1, %v3046_v14 }
  0xec   : > { %v2639_v8 = vpop.f32.mrb[0].mxu0 }
  0xed   : > { %v301_v9 = vpop.f32.mrb[1].mxu0  ;;  %v3136_v17 = vpack.c.bf16 %v2639_v8, %v2639_v8 }
  0xee   : > { %v2640_v10 = vpop.f32.mrb[2].mxu0  ;;  %v3128_v15 = vpack.c.bf16 %v301_v9, %v301_v9 }
  0xef   : > { %v304_v11 = vpop.f32.mrb[3].mxu0  ;;  %v2923_v12 = vpack.i.bf16 %v2640_v10, %v2639_v8  ;;  %v3138_v18 = vpack.c.bf16 %v2640_v10, %v2640_v10 }
  0xf0   : > { %v2918_v13 = vpack.i.bf16 %v304_v11, %v301_v9  ;;  %v3130_v16 = vpack.c.bf16 %v304_v11, %v304_v11 }
  0xf2   : > { %2919 = vrot.lane.b32.xlu1 %v2918_v13, %s3044_s7  ;;  %2909 = vrot.lane.b32.xlu0 %v2918_v13, %s3045_s8 }
  0xf6   : > { %2924 = vrot.lane.b32.xlu1 %v2923_v12, %s3044_s7  ;;  %2914 = vrot.lane.b32.xlu0 %v2923_v12, %s3045_s8 }
  0xfa   : > { %2934 = vrot.lane.b32.xlu1 %v2923_v12, %s3048_s9  ;;  %2929 = vrot.lane.b32.xlu0 %v2918_v13, %s3048_s9 }
  0xfe   : > { %373 = vrot.lane.b32.xlu0 %v3128_v15, %s3049_s10  ;;  %423 = vrot.lane.b32.xlu1 %v3130_v16, %s3049_s10 }
 0x102   : > { %472 = vrot.lane.b32.xlu0 %v3136_v17, %s3049_s10  ;;  %521 = vrot.lane.b32.xlu1 %v3138_v18, %s3049_s10 }
 0x164   : > { %v2920_v19 = vpop.permute.xlu1 %2919  ;;  %v2910_v20 = vpop.permute.xlu0 %2909 }
 0x165   : > { %v2912_v21 = vunpack.i.h.bf16 %v2910_v20  ;;  %v2911_v22 = vunpack.i.l.bf16 %v2910_v20  ;;  %v2922_v29 = vunpack.i.h.bf16 %v2920_v19  ;;  %v2921_v30 = vunpack.i.l.bf16 %v2920_v19 }
 0x167   : > { %v3144_v23 = vpack.c.bf16 %v2912_v21, %v2912_v21  ;;  %v3146_v24 = vpack.c.bf16 %v2911_v22, %v2911_v22  ;;  %v3160_v35 = vpack.c.bf16 %v2922_v29, %v2922_v29  ;;  %v3162_v36 = vpack.c.bf16 %v2921_v30, %v2921_v30 }
 0x168   : > { %v2925_v25 = vpop.permute.xlu1 %2924  ;;  %v2915_v26 = vpop.permute.xlu0 %2914 }
 0x169   : > { %v2917_v27 = vunpack.i.h.bf16 %v2915_v26  ;;  %v2916_v28 = vunpack.i.l.bf16 %v2915_v26  ;;  %570 = vrot.lane.b32.xlu0 %v3146_v24, %s3049_s10  ;;  %619 = vrot.lane.b32.xlu1 %v3144_v23, %s3049_s10  ;;  %v2927_v37 = vunpack.i.h.bf16 %v2925_v25  ;;  %v2926_v38 = vunpack.i.l.bf16 %v2925_v25 }
 0x16b   : > { %v3152_v31 = vpack.c.bf16 %v2917_v27, %v2917_v27  ;;  %v3154_v32 = vpack.c.bf16 %v2916_v28, %v2916_v28  ;;  %v3170_v43 = vpack.c.bf16 %v2927_v37, %v2927_v37  ;;  %v3172_v44 = vpack.c.bf16 %v2926_v38, %v2926_v38 }
 0x16c   : > { %v2935_v33 = vpop.permute.xlu1 %2934  ;;  %v2930_v34 = vpop.permute.xlu0 %2929 }
 0x16d   : > { %668 = vrot.lane.b32.xlu0 %v3154_v32, %s3049_s10  ;;  %717 = vrot.lane.b32.xlu1 %v3152_v31, %s3049_s10  ;;  %v2931_v45 = vunpack.i.l.bf16 %v2930_v34  ;;  %v2932_v46 = vunpack.i.h.bf16 %v2930_v34  ;;  %v2936_v47 = vunpack.i.l.bf16 %v2935_v33  ;;  %v2937_v51 = vunpack.i.h.bf16 %v2935_v33 }
 0x16f   : > { %v3180_v48 = vpack.c.bf16 %v2931_v45, %v2931_v45  ;;  %v3182_v52 = vpack.c.bf16 %v2932_v46, %v2932_v46  ;;  %v3194_v55 = vpack.c.bf16 %v2936_v47, %v2936_v47  ;;  %v3196_v56 = vpack.c.bf16 %v2937_v51, %v2937_v51 }
 0x170   : > { %v374_v39 = vpop.permute.xlu0 %373  ;;  %v424_v40 = vpop.permute.xlu1 %423 }
 0x171   : > { %v429_v41 = vsel %vm375_vm2, %v424_v40, 0  ;;  %766 = vrot.lane.b32.xlu0 %v3162_v36, %s3049_s10  ;;  %815 = vrot.lane.b32.xlu1 %v3160_v35, %s3049_s10  ;;  %v380_v42 = vsel %vm375_vm2, %v374_v39, 0 }
 0x172   : > { %2642 = vmatpush3.bf16.xpose.msra.mxu1 %v380_v42  ;;  %2648 = vmatpush3.bf16.xpose.msra.mxu0 %v429_v41 }
 0x173   : > { %2653 = vmatprep.subr.bf16.mxu1 %v3046_v14  ;;  %2659 = vmatprep.subr.bf16.mxu0 %v3046_v14 }
 0x174   : > { %v473_v49 = vpop.permute.xlu0 %472  ;;  %v522_v50 = vpop.permute.xlu1 %521 }
 0x175   : > { %864 = vrot.lane.b32.xlu0 %v3172_v44, %s3049_s10  ;;  %913 = vrot.lane.b32.xlu1 %v3170_v43, %s3049_s10  ;;  %v478_v53 = vsel %vm375_vm2, %v473_v49, 0  ;;  %v527_v54 = vsel %vm375_vm2, %v522_v50, 0 }
 0x179   : > { %2644 = vmatmul.mubr.msk.bf16.vlgmr.msra.gmra.mrb[0].mxu1 %vm375_vm2, %v3128_v15  ;;  %962 = vrot.lane.b32.xlu0 %v3180_v48, %s3049_s10 }
 0x17a   : > { %1011 = vrot.lane.b32.xlu1 %v3182_v52, %s3049_s10  ;;  %2650 = vmatmul.mubr.msk.bf16.vlgmr.msra.gmra.mrb[4].mxu0 %vm375_vm2, %v3130_v16 }
 0x17b   : > { %2654 = vmatpush3.bf16.xpose.msra.mxu1 %v478_v53  ;;  %2660 = vmatpush3.bf16.xpose.msra.mxu0 %v527_v54 }
 0x17c   : > { %2655 = vmatprep.mubr.msk.bf16.mxu1 %vm3047_vm1, %v3046_v14  ;;  %2661 = vmatprep.mubr.msk.bf16.mxu0 %vm3047_vm1, %v3046_v14 }
 0x17d   : > { %1060 = vrot.lane.b32.xlu0 %v3194_v55, %s3049_s10  ;;  %2665 = vmatprep.subr.bf16.mxu1 %v3046_v14 }
 0x17e   : > { %1109 = vrot.lane.b32.xlu1 %v3196_v56, %s3049_s10  ;;  %2671 = vmatprep.subr.bf16.mxu0 %v3046_v14 }
 0x181   : > { %1398 = vrot.lane.b32.xlu0 %v3130_v16, %s3050_s11 }
 0x182   : > { %2656 = vmatmul.mubr.msk.bf16.vlgmr.msra.gmra.mrb[4].mxu1 %vm375_vm2, %v3136_v17  ;;  %1349 = vrot.lane.b32.xlu1 %v3128_v15, %s3050_s11 }
 0x183   : > { %2662 = vmatmul.mubr.msk.bf16.vlgmr.msra.gmra.mrb[8].mxu0 %vm375_vm2, %v3138_v18  ;;  %2667 = vmatprep.mubr.msk.bf16.mxu1 %vm3047_vm1, %v3046_v14 }
 0x184   : > { %2673 = vmatprep.mubr.msk.bf16.mxu0 %vm3047_vm1, %v3046_v14 }
 0x185   : > { %1494 = vrot.lane.b32.xlu0 %v3138_v18, %s3050_s11 }
 0x186   : > { %1446 = vrot.lane.b32.xlu1 %v3136_v17, %s3050_s11 }
 0x189   : > { %1686 = vrot.lane.b32.xlu0 %v3152_v31, %s3050_s11 }
 0x18a   : > { %1542 = vrot.lane.b32.xlu1 %v3146_v24, %s3050_s11 }
 0x18d   : > { %1590 = vrot.lane.b32.xlu0 %v3144_v23, %s3050_s11 }
 0x18e   : > { %1638 = vrot.lane.b32.xlu1 %v3154_v32, %s3050_s11 }
 0x192   : > { %1734 = vrot.lane.b32.xlu1 %v3162_v36, %s3050_s11 }
 0x1db   : > { %v571_v57 = vpop.permute.xlu0 %570  ;;  %v620_v58 = vpop.permute.xlu1 %619 }
 0x1dc   : > { %v576_v59 = vsel %vm375_vm2, %v571_v57, 0  ;;  %v625_v60 = vsel %vm375_vm2, %v620_v58, 0 }
 0x1dd   : > { %2666 = vmatpush3.bf16.xpose.msra.mxu1 %v576_v59  ;;  %2672 = vmatpush3.bf16.xpose.msra.mxu0 %v625_v60 }
 0x1de   : > { %2677 = vmatprep.subr.bf16.mxu1 %v3046_v14  ;;  %2683 = vmatprep.subr.bf16.mxu0 %v3046_v14 }
 0x1df   : > { %v669_v61 = vpop.permute.xlu0 %668  ;;  %v718_v62 = vpop.permute.xlu1 %717 }
 0x1e0   : > { %v674_v63 = vsel %vm375_vm2, %v669_v61, 0  ;;  %v723_v0 = vsel %vm375_vm2, %v718_v62, 0 }
 0x1e3   : > { %v767_v1 = vpop.permute.xlu0 %766  ;;  %v816_v2 = vpop.permute.xlu1 %815 }
 0x1e4   : > { %2668 = vmatmul.mubr.msk.bf16.vlgmr.msra.gmra.mrb[8].mxu1 %vm375_vm2, %v3146_v24  ;;  %2674 = vmatmul.mubr.msk.bf16.vlgmr.msra.gmra.mrb[12].mxu0 %vm375_vm2, %v3144_v23  ;;  %v772_v3 = vsel %vm375_vm2, %v767_v1, 0  ;;  %v821_v4 = vsel %vm375_vm2, %v816_v2, 0 }
 0x1e5   : > { %2678 = vmatpush3.bf16.xpose.msra.mxu1 %v674_v63  ;;  %2684 = vmatpush3.bf16.xpose.msra.mxu0 %v723_v0 }
 0x1e6   : > { %2679 = vmatprep.mubr.msk.bf16.mxu1 %vm3047_vm1, %v3046_v14  ;;  %2685 = vmatprep.mubr.msk.bf16.mxu0 %vm3047_vm1, %v3046_v14 }
 0x1e7   : > { %2689 = vmatprep.subr.bf16.mxu1 %v3046_v14  ;;  %2695 = vmatprep.subr.bf16.mxu0 %v3046_v14  ;;  %v865_v5 = vpop.permute.xlu0 %864  ;;  %v914_v6 = vpop.permute.xlu1 %913 }
 0x1e8   : > { %v870_v7 = vsel %vm375_vm2, %v865_v5, 0  ;;  %v919_v8 = vsel %vm375_vm2, %v914_v6, 0 }
 0x1eb   : > { %v963_v9 = vpop.permute.xlu0 %962 }
 0x1ec   : > { %2680 = vmatmul.mubr.msk.bf16.vlgmr.msra.gmra.mrb[12].mxu1 %vm375_vm2, %v3154_v32  ;;  %2686 = vmatmul.mubr.msk.bf16.vlgmr.msra.gmra.mrb[16].mxu0 %vm375_vm2, %v3152_v31  ;;  %v1012_v10 = vpop.permute.xlu1 %1011  ;;  %v968_v11 = vsel %vm375_vm2, %v963_v9, 0 }
 0x1ed   : > { %2690 = vmatpush3.bf16.xpose.msra.mxu1 %v772_v3  ;;  %2696 = vmatpush3.bf16.xpose.msra.mxu0 %v821_v4  ;;  %v1017_v12 = vsel %vm375_vm2, %v1012_v10, 0 }
 0x1ee   : > { %2691 = vmatprep.mubr.msk.bf16.mxu1 %vm3047_vm1, %v3046_v14  ;;  %2697 = vmatprep.mubr.msk.bf16.mxu0 %vm3047_vm1, %v3046_v14 }
 0x1ef   : > { %2701 = vmatprep.subr.bf16.mxu1 %v3046_v14  ;;  %2707 = vmatprep.subr.bf16.mxu0 %v3046_v14  ;;  %v1061_v13 = vpop.permute.xlu0 %1060 }
 0x1f0   : > { %v1110_v15 = vpop.permute.xlu1 %1109  ;;  %v1066_v16 = vsel %vm375_vm2, %v1061_v13, 0 }
 0x1f1   : > { %v1115_v17 = vsel %vm375_vm2, %v1110_v15, 0 }
 0x1f3   : > { %v1399_v18 = vpop.permute.xlu0 %1398 }
 0x1f4   : > { %2692 = vmatmul.mubr.msk.bf16.vlgmr.msra.gmra.mrb[16].mxu1 %vm375_vm2, %v3162_v36  ;;  %2698 = vmatmul.mubr.msk.bf16.vlgmr.msra.gmra.mrb[20].mxu0 %vm375_vm2, %v3160_v35  ;;  %v1350_v19 = vpop.permute.xlu1 %1349  ;;  %v1404_v20 = vsel %vm1354_vm3, %v1399_v18, 0 }
 0x1f5   : > { %2702 = vmatpush3.bf16.xpose.msra.mxu1 %v870_v7  ;;  %2708 = vmatpush3.bf16.xpose.msra.mxu0 %v919_v8  ;;  %v1356_v21 = vsel %vm1354_vm3, %v1350_v19, 0 }
 0x1f6   : > { %2703 = vmatprep.mubr.msk.bf16.mxu1 %vm3047_vm1, %v3046_v14  ;;  %2709 = vmatprep.mubr.msk.bf16.mxu0 %vm3047_vm1, %v3046_v14 }
 0x1f7   : > { %2713 = vmatprep.subr.bf16.mxu1 %v3046_v14  ;;  %2719 = vmatprep.subr.bf16.mxu0 %v3046_v14 }
 0x1fc   : > { %2704 = vmatmul.mubr.msk.bf16.vlgmr.msra.gmra.mrb[20].mxu1 %vm375_vm2, %v3172_v44  ;;  %2710 = vmatmul.mubr.msk.bf16.vlgmr.msra.gmra.mrb[24].mxu0 %vm375_vm2, %v3170_v43 }
 0x1fd   : > { %2714 = vmatpush3.bf16.xpose.msra.mxu1 %v968_v11  ;;  %2720 = vmatpush3.bf16.xpose.msra.mxu0 %v1017_v12 }
 0x1fe   : > { %2715 = vmatprep.mubr.msk.bf16.mxu1 %vm3047_vm1, %v3046_v14  ;;  %2721 = vmatprep.mubr.msk.bf16.mxu0 %vm3047_vm1, %v3046_v14 }
 0x1ff   : > { %2725 = vmatprep.subr.bf16.mxu1 %v3046_v14  ;;  %2731 = vmatprep.subr.bf16.mxu0 %v3046_v14 }
 0x204   : > { %2716 = vmatmul.mubr.msk.bf16.vlgmr.msra.gmra.mrb[24].mxu1 %vm375_vm2, %v3180_v48  ;;  %2722 = vmatmul.mubr.msk.bf16.vlgmr.msra.gmra.mrb[28].mxu0 %vm375_vm2, %v3182_v52 }
 0x205   : > { %2726 = vmatpush3.bf16.xpose.msra.mxu1 %v1066_v16  ;;  %2732 = vmatpush3.bf16.xpose.msra.mxu0 %v1115_v17 }
 0x206   : > { %2727 = vmatprep.mubr.msk.bf16.mxu1 %vm3047_vm1, %v3046_v14  ;;  %2733 = vmatprep.mubr.msk.bf16.mxu0 %vm3047_vm1, %v3046_v14 }
 0x207   : > { %2737 = vmatprep.subr.bf16.mxu1 %v3046_v14  ;;  %2743 = vmatprep.subr.bf16.mxu0 %v3046_v14 }
 0x20c   : > { %2728 = vmatmul.mubr.msk.bf16.vlgmr.msra.gmra.mrb[28].mxu1 %vm375_vm2, %v3194_v55  ;;  %2734 = vmatmul.mubr.msk.bf16.vlgmr.msra.gmra.mrb[32].mxu0 %vm375_vm2, %v3196_v56 }
 0x20d   : > { %2738 = vmatpush3.bf16.msra.mxu1 %v1356_v21  ;;  %2744 = vmatpush3.bf16.msra.mxu0 %v1404_v20 }
 0x20e   : > { %2745 = vmatprep.mubr.msk.bf16.mxu0 %vm3047_vm1, %v3046_v14  ;;  %2755 = vmatprep.subr.bf16.mxu0 %v3046_v14 }
 0x20f   : > { %2739 = vmatprep.mubr.msk.bf16.mxu1 %vm3047_vm1, %v3046_v14  ;;  %2749 = vmatprep.subr.bf16.mxu1 %v3046_v14 }
 0x24c   : > { %v3310_v22 = vpop.f32.mrb[0].mxu1 }
 0x24d   : > { %v3312_v23 = vpop.f32.mrb[4].mxu0  ;;  %v2645_v24 = vpop.f32.mrb[1].mxu1  ;;  %v1157_v25 = vsel %vm375_vm2, %v3310_v22, -inf }
 0x24e   : > { %v2651_v26 = vpop.f32.mrb[5].mxu0  ;;  %v419_v27 = vpop.f32.mrb[2].mxu1  ;;  %1158 = vmax.xlane.f32.xlu0 %v1157_v25  ;;  %v1160_v28 = vsel %vm375_vm2, %v3312_v23, -inf }
 0x24f   : > { %1161 = vmax.xlane.f32.xlu1 %v1160_v28  ;;  %v468_v29 = vpop.f32.mrb[6].mxu0  ;;  %v2646_v30 = vpop.f32.mrb[3].mxu1 }
 0x250   : > { %v2652_v31 = vpop.f32.mrb[7].mxu0 }
 0x255   : > { %v3318_v32 = vpop.f32.mrb[4].mxu1 }
 0x256   : > { %v3320_v33 = vpop.f32.mrb[8].mxu0  ;;  %v2657_v34 = vpop.f32.mrb[5].mxu1  ;;  %v1163_v36 = vsel %vm375_vm2, %v3318_v32, -inf }
 0x257   : > { %v2663_v37 = vpop.f32.mrb[9].mxu0  ;;  %v517_v38 = vpop.f32.mrb[6].mxu1  ;;  %1164 = vmax.xlane.f32.xlu0 %v1163_v36  ;;  %v1166_v42 = vsel %vm375_vm2, %v3320_v33, -inf }
 0x258   : > { %v566_v39 = vpop.f32.mrb[10].mxu0  ;;  %v2658_v40 = vpop.f32.mrb[7].mxu1 }
 0x259   : > { %v2664_v41 = vpop.f32.mrb[11].mxu0 }
 0x25b   : > { %1167 = vmax.xlane.f32.xlu0 %v1166_v42 }
 0x2b7   : > { %v3326_v45 = vpop.f32.mrb[8].mxu1  ;;  %v3328_v46 = vpop.f32.mrb[12].mxu0 }
 0x2b8   : > { %v2669_v47 = vpop.f32.mrb[9].mxu1  ;;  %v2675_v49 = vpop.f32.mrb[13].mxu0  ;;  %v1169_v50 = vsel %vm375_vm2, %v3326_v45, -inf  ;;  %v1172_v51 = vsel %vm375_vm2, %v3328_v46, -inf }
 0x2b9   : > { %v615_v53 = vpop.f32.mrb[10].mxu1  ;;  %1170 = vmax.xlane.f32.xlu1 %v1169_v50  ;;  %1173 = vmax.xlane.f32.xlu0 %v1172_v51  ;;  %v664_v54 = vpop.f32.mrb[14].mxu0 }
 0x2ba   : > { %v2670_v57 = vpop.f32.mrb[11].mxu1  ;;  %v2676_v58 = vpop.f32.mrb[15].mxu0 }
 0x2bf   : > { %v3334_v59 = vpop.f32.mrb[12].mxu1  ;;  %v3336_v60 = vpop.f32.mrb[16].mxu0 }
 0x2c0   : > { %v2681_v61 = vpop.f32.mrb[13].mxu1  ;;  %v2687_v62 = vpop.f32.mrb[17].mxu0  ;;  %v1175_v63 = vsel %vm375_vm2, %v3334_v59, -inf  ;;  %v1178_v0 = vsel %vm375_vm2, %v3336_v60, -inf }
 0x2c1   : > { %v713_v1 = vpop.f32.mrb[14].mxu1  ;;  %1176 = vmax.xlane.f32.xlu1 %v1175_v63  ;;  %1179 = vmax.xlane.f32.xlu0 %v1178_v0  ;;  %v762_v2 = vpop.f32.mrb[18].mxu0 }
 0x2c2   : > { %v2682_v3 = vpop.f32.mrb[15].mxu1  ;;  %v2688_v4 = vpop.f32.mrb[19].mxu0 }
 0x2c3   : > { %v3374_v61 = vpop.permute.xlu0 %1494  ;;  %v3376_v62 = vpop.permute.xlu1 %1446 }
 0x2c7   : > { %v3342_v5 = vpop.f32.mrb[16].mxu1  ;;  %v3344_v6 = vpop.f32.mrb[20].mxu0 }
 0x2c8   : > { %v2693_v7 = vpop.f32.mrb[17].mxu1  ;;  %v2699_v8 = vpop.f32.mrb[21].mxu0  ;;  %v1181_v9 = vsel %vm375_vm2, %v3342_v5, -inf  ;;  %v1184_v10 = vsel %vm375_vm2, %v3344_v6, -inf }
 0x2c9   : > { %v811_v11 = vpop.f32.mrb[18].mxu1  ;;  %1182 = vmax.xlane.f32.xlu1 %v1181_v9  ;;  %1185 = vmax.xlane.f32.xlu0 %v1184_v10  ;;  %v860_v12 = vpop.f32.mrb[22].mxu0 }
 0x2ca   : > { %v2694_v13 = vpop.f32.mrb[19].mxu1  ;;  %v2700_v15 = vpop.f32.mrb[23].mxu0 }
 0x2cb   : > { %v3378_v63 = vpop.permute.xlu0 %1686  ;;  %v3380_v0 = vpop.permute.xlu1 %1542 }
 0x2cf   : > { %v3350_v16 = vpop.f32.mrb[20].mxu1  ;;  %v3352_v17 = vpop.f32.mrb[24].mxu0 }
 0x2d0   : > { %v2705_v18 = vpop.f32.mrb[21].mxu1  ;;  %v2711_v19 = vpop.f32.mrb[25].mxu0  ;;  %v1187_v20 = vsel %vm375_vm2, %v3350_v16, -inf  ;;  %v1190_v21 = vsel %vm375_vm2, %v3352_v17, -inf }
 0x2d1   : > { %v909_v24 = vpop.f32.mrb[22].mxu1  ;;  %1188 = vmax.xlane.f32.xlu1 %v1187_v20  ;;  %1191 = vmax.xlane.f32.xlu0 %v1190_v21  ;;  %v958_v25 = vpop.f32.mrb[26].mxu0 }
 0x2d2   : > { %v2706_v26 = vpop.f32.mrb[23].mxu1  ;;  %v2712_v27 = vpop.f32.mrb[27].mxu0 }
 0x2d3   : > { %v3384_v1 = vpop.permute.xlu0 %1590  ;;  %v3386_v2 = vpop.permute.xlu1 %1638 }
 0x2d7   : > { %v3358_v28 = vpop.f32.mrb[24].mxu1  ;;  %v3360_v29 = vpop.f32.mrb[28].mxu0 }
 0x2d8   : > { %v2717_v30 = vpop.f32.mrb[25].mxu1  ;;  %v2723_v31 = vpop.f32.mrb[29].mxu0  ;;  %v1193_v34 = vsel %vm375_vm2, %v3358_v28, -inf  ;;  %v1196_v36 = vsel %vm375_vm2, %v3360_v29, -inf }
 0x2d9   : > { %v1007_v37 = vpop.f32.mrb[26].mxu1  ;;  %1194 = vmax.xlane.f32.xlu1 %v1193_v34  ;;  %1197 = vmax.xlane.f32.xlu0 %v1196_v36  ;;  %v1056_v38 = vpop.f32.mrb[30].mxu0 }
 0x2da   : > { %v2718_v39 = vpop.f32.mrb[27].mxu1  ;;  %v2724_v40 = vpop.f32.mrb[31].mxu0 }
 0x2db   : > { %v1159_v3 = vpop.xlane.xlu0 %1158  ;;  %v3392_v4 = vpop.permute.xlu1 %1734 }
 0x2df   : > { %v3366_v41 = vpop.f32.mrb[28].mxu1  ;;  %v3368_v42 = vpop.f32.mrb[32].mxu0 }
 0x2e0   : > { %v2729_v47 = vpop.f32.mrb[29].mxu1  ;;  %v2735_v49 = vpop.f32.mrb[33].mxu0  ;;  %v1199_v50 = vsel %vm375_vm2, %v3366_v41, -inf  ;;  %v1202_v51 = vsel %vm375_vm2, %v3368_v42, -inf }
 0x2e1   : > { %v1105_v53 = vpop.f32.mrb[30].mxu1  ;;  %1200 = vmax.xlane.f32.xlu1 %v1199_v50  ;;  %1203 = vmax.xlane.f32.xlu0 %v1202_v51  ;;  %v1154_v54 = vpop.f32.mrb[34].mxu0 }
 0x2e2   : > { %v2730_v57 = vpop.f32.mrb[31].mxu1  ;;  %v2736_v58 = vpop.f32.mrb[35].mxu0 }
 0x2e3   : > { %v1162_v8 = vpop.xlane.xlu1 %1161 }
 0x2e4   : > { %v1165_v7 = vpop.xlane.xlu0 %1164  ;;  %v1206_v9 = vsub.f32 %v3312_v23, %v1162_v8 }
 0x2e6   : > { %v1223_v11 = vmul.f32 1.442695, %v1206_v9 }
 0x2e8   : > { %v1168_v10 = vpop.xlane.xlu0 %1167  ;;  %2940 = vpow2.f32 %v1223_v11 }
 0x2e9   : > { %v1208_v12 = vsub.f32 %v3320_v33, %v1168_v10 }
 0x2eb   : > { %v1227_v15 = vmul.f32 1.442695, %v1208_v12 }
 0x2f2   : > { %1830 = vrot.lane.b32.xlu1 %v3172_v44, %s3050_s11  ;;  %v1205_v44 = vsub.f32 %v3310_v22, %v1159_v3 }
 0x2f4   : > { %v1221_v13 = vmul.f32 1.442695, %v1205_v44 }
 0x2f6   : > { %1878 = vrot.lane.b32.xlu1 %v3170_v43, %s3050_s11  ;;  %v1207_v43 = vsub.f32 %v3318_v32, %v1165_v7  ;;  %2942 = vpow2.f32 %v1221_v13 }
 0x2f7   : > { %1782 = vrot.lane.b32.xlu0 %v3160_v35, %s3050_s11  ;;  %2944 = vpow2.f32 %v1227_v15  ;;  %v3398_v35 = vpop.eup %2940 }
 0x2f8   : > { %v1225_v18 = vmul.f32 1.442695, %v1207_v43  ;;  %v1256_v23 = vsel %vm375_vm2, %v3398_v35, 0.0 }
 0x2fa   : > { %2946 = vpow2.f32 %v1225_v18 }
 0x300   : > { %v3400_v19 = vpop.eup %2942 }
 0x301   : > { %v3404_v22 = vpop.eup %2944  ;;  %v1253_v33 = vsel %vm375_vm2, %v3400_v19, 0.0 }
 0x302   : > { %v1262_v32 = vsel %vm375_vm2, %v3404_v22, 0.0 }
 0x304   : > { %v3410_v20 = vpop.eup %2946 }
 0x305   : > { %v1259_v21 = vsel %vm375_vm2, %v3410_v20, 0.0 }
 0x316   : > { %1257 = vadd.xlane.f32.xlu0 %v1256_v23 }
 0x31a   : > { %1254 = vadd.xlane.f32.xlu1 %v1253_v33  ;;  %1263 = vadd.xlane.f32.xlu0 %v1262_v32 }
 0x31e   : > { %1260 = vadd.xlane.f32.xlu1 %v1259_v21 }
 0x346   : > { %v1174_v24 = vpop.xlane.xlu0 %1173  ;;  %v1171_v25 = vpop.xlane.xlu1 %1170 }
 0x347   : > { %v1210_v26 = vsub.f32 %v3328_v46, %v1174_v24  ;;  %v1209_v27 = vsub.f32 %v3326_v45, %v1171_v25 }
 0x349   : > { %v1231_v30 = vmul.f32 1.442695, %v1210_v26  ;;  %v1229_v31 = vmul.f32 1.442695, %v1209_v27 }
 0x34b   : > { %2948 = vpow2.f32 %v1231_v30 }
 0x34c   : > { %2950 = vpow2.f32 %v1229_v31 }
 0x34e   : > { %v1180_v34 = vpop.xlane.xlu0 %1179  ;;  %v1177_v36 = vpop.xlane.xlu1 %1176 }
 0x34f   : > { %v1212_v37 = vsub.f32 %v3336_v60, %v1180_v34  ;;  %v1211_v38 = vsub.f32 %v3334_v59, %v1177_v36 }
 0x351   : > { %v1235_v39 = vmul.f32 1.442695, %v1212_v37  ;;  %v1233_v40 = vmul.f32 1.442695, %v1211_v38 }
 0x353   : > { %2952 = vpow2.f32 %v1235_v39 }
 0x354   : > { %2954 = vpow2.f32 %v1233_v40 }
 0x355   : > { %v3418_v47 = vpop.eup %2948 }
 0x356   : > { %v3420_v49 = vpop.eup %2950  ;;  %v1186_v46 = vpop.xlane.xlu0 %1185  ;;  %v1268_v50 = vsel %vm375_vm2, %v3418_v47, 0.0 }
 0x357   : > { %v1183_v45 = vpop.xlane.xlu1 %1182  ;;  %v1214_v51 = vsub.f32 %v3344_v6, %v1186_v46  ;;  %1269 = vadd.xlane.f32.xlu0 %v1268_v50  ;;  %v1265_v59 = vsel %vm375_vm2, %v3420_v49, 0.0 }
 0x358   : > { %v1213_v53 = vsub.f32 %v3342_v5, %v1183_v45  ;;  %1266 = vadd.xlane.f32.xlu1 %v1265_v59 }
 0x359   : > { %v1239_v60 = vmul.f32 1.442695, %v1214_v51 }
 0x35a   : > { %v1237_v54 = vmul.f32 1.442695, %v1213_v53 }
 0x35b   : > { %2956 = vpow2.f32 %v1239_v60 }
 0x35c   : > { %2958 = vpow2.f32 %v1237_v54 }
 0x35d   : > { %v3428_v57 = vpop.eup %2952 }
 0x35e   : > { %v3430_v58 = vpop.eup %2954  ;;  %v1192_v3 = vpop.xlane.xlu0 %1191  ;;  %v1274_v6 = vsel %vm375_vm2, %v3428_v57, 0.0 }
 0x35f   : > { %v1189_v7 = vpop.xlane.xlu1 %1188  ;;  %v1216_v5 = vsub.f32 %v3352_v17, %v1192_v3  ;;  %1275 = vadd.xlane.f32.xlu0 %v1274_v6  ;;  %v1271_v9 = vsel %vm375_vm2, %v3430_v58, 0.0  ;;  %v1500_v6 = vsel %vm1354_vm3, %v3374_v61, 0 }
 0x360   : > { %v1215_v8 = vsub.f32 %v3350_v16, %v1189_v7  ;;  %1272 = vadd.xlane.f32.xlu1 %v1271_v9 }
 0x361   : > { %v1243_v10 = vmul.f32 1.442695, %v1216_v5 }
 0x362   : > { %v1241_v44 = vmul.f32 1.442695, %v1215_v8 }
 0x363   : > { %2960 = vpow2.f32 %v1243_v10  ;;  %v1452_v10 = vsel %vm1354_vm3, %v3376_v62, 0 }
 0x364   : > { %2962 = vpow2.f32 %v1241_v44 }
 0x365   : > { %v3438_v11 = vpop.eup %2956 }
 0x366   : > { %v3440_v12 = vpop.eup %2958  ;;  %v1280_v13 = vsel %vm375_vm2, %v3438_v11, 0.0  ;;  %v1198_v23 = vpop.xlane.xlu0 %1197 }
 0x367   : > { %1281 = vadd.xlane.f32.xlu0 %v1280_v13  ;;  %v1277_v16 = vsel %vm375_vm2, %v3440_v12, 0.0  ;;  %v1195_v33 = vpop.xlane.xlu1 %1194  ;;  %v1218_v32 = vsub.f32 %v3360_v29, %v1198_v23 }
 0x368   : > { %1278 = vadd.xlane.f32.xlu1 %v1277_v16  ;;  %v1217_v21 = vsub.f32 %v3358_v28, %v1195_v33  ;;  %v1692_v33 = vsel %vm1354_vm3, %v3378_v63, 0 }
 0x369   : > { %v1247_v26 = vmul.f32 1.442695, %v1218_v32 }
 0x36a   : > { %v1245_v30 = vmul.f32 1.442695, %v1217_v21  ;;  %v1644_v21 = vsel %vm1354_vm3, %v3386_v2, 0 }
 0x36b   : > { %2964 = vpow2.f32 %v1247_v26 }
 0x36c   : > { %2966 = vpow2.f32 %v1245_v30 }
 0x36d   : > { %v3446_v17 = vpop.eup %2960 }
 0x36e   : > { %v3448_v43 = vpop.eup %2962  ;;  %v1286_v15 = vsel %vm375_vm2, %v3446_v17, 0.0  ;;  %v1204_v24 = vpop.xlane.xlu0 %1203 }
 0x36f   : > { %1287 = vadd.xlane.f32.xlu0 %v1286_v15  ;;  %v1283_v18 = vsel %vm375_vm2, %v3448_v43, 0.0  ;;  %v1201_v25 = vpop.xlane.xlu1 %1200  ;;  %v1220_v27 = vsub.f32 %v3368_v42, %v1204_v24 }
 0x370   : > { %1284 = vadd.xlane.f32.xlu1 %v1283_v18  ;;  %v1219_v31 = vsub.f32 %v3366_v41, %v1201_v25 }
 0x371   : > { %v1251_v34 = vmul.f32 1.442695, %v1220_v27 }
 0x372   : > { %v3464_v36 = vpop.permute.xlu0 %1782 }
 0x373   : > { %2968 = vpow2.f32 %v1251_v34  ;;  %v1788_v27 = vsel %vm1354_vm3, %v3464_v36, 0 }
 0x375   : > { %v3466_v29 = vpop.eup %2964 }
 0x376   : > { %v3468_v28 = vpop.eup %2966  ;;  %v1292_v41 = vsel %vm375_vm2, %v3466_v29, 0.0 }
 0x377   : > { %v1289_v39 = vsel %vm375_vm2, %v3468_v28, 0.0 }
 0x37d   : > { %v3474_v38 = vpop.eup %2968 }
 0x37e   : > { %v1298_v50 = vsel %vm375_vm2, %v3474_v38, 0.0 }
 0x381   : > { %1974 = vrot.lane.b32.xlu1 %v3182_v52, %s3050_s11  ;;  %v1249_v52 = vmul.f32 1.442695, %v1219_v31  ;;  %v1740_v31 = vsel %vm1354_vm3, %v3392_v4, 0 }
 0x383   : > { %2970 = vpow2.f32 %v1249_v52 }
 0x385   : > { %1926 = vrot.lane.b32.xlu0 %v3180_v48, %s3050_s11  ;;  %v3462_v48 = vpop.permute.xlu1 %1830 }
 0x389   : > { %v3470_v37 = vpop.permute.xlu1 %1878 }
 0x38d   : > { %v3478_v40 = vpop.eup %2970 }
 0x38e   : > { %v1295_v51 = vsel %vm375_vm2, %v3478_v40, 0.0 }
 0x3a3   : > { %v1258_v42 = vpop.xlane.xlu0 %1257 }
 0x3a4   : > { %2972 = vrcp.f32 %v1258_v42  ;;  %1293 = vadd.xlane.f32.xlu0 %v1292_v41  ;;  %v1884_v41 = vsel %vm1354_vm3, %v3470_v37, 0 }
 0x3a5   : > { %1290 = vadd.xlane.f32.xlu1 %v1289_v39  ;;  %v1836_v39 = vsel %vm1354_vm3, %v3462_v48, 0 }
 0x3a7   : > { %v1264_v46 = vpop.xlane.xlu0 %1263  ;;  %v1255_v45 = vpop.xlane.xlu1 %1254 }
 0x3a8   : > { %2974 = vrcp.f32 %v1264_v46  ;;  %1299 = vadd.xlane.f32.xlu0 %v1298_v50 }
 0x3a9   : > { %2976 = vrcp.f32 %v1255_v45  ;;  %1296 = vadd.xlane.f32.xlu1 %v1295_v51 }
 0x3ab   : > { %v1261_v53 = vpop.xlane.xlu1 %1260 }
 0x3ac   : > { %2978 = vrcp.f32 %v1261_v53 }
 0x3ae   : > { %v2973_v59 = vpop.eup %2972 }
 0x3af   : > { %v1318_v60 = vmul.f32 %v2973_v59, %v3398_v35 }
 0x3b1   : > { %v1334_v54 = vpack.c.bf16 %v1318_v60, %v1318_v60 }
 0x3b2   : > { %v2975_v3 = vpop.eup %2974 }
 0x3b3   : > { %v2977_v7 = vpop.eup %2976  ;;  %2746 = vmatmul.mubr.msk.bf16.vlgmr.msra.gmra.mrb[36].mxu0 %vm375_vm2, %v1334_v54  ;;  %v1320_v8 = vmul.f32 %v2975_v3, %v3404_v22  ;;  %v1596_v22 = vsel %vm1354_vm3, %v3384_v1, 0 }
 0x3b4   : > { %v1317_v5 = vmul.f32 %v2977_v7, %v3400_v19  ;;  %2756 = vmatpush3.bf16.msra.mxu0 %v1500_v6  ;;  %2757 = vmatprep.mubr.msk.bf16.mxu0 %vm3047_vm1, %v3046_v14 }
 0x3b5   : > { %2767 = vmatprep.subr.bf16.mxu0 %v3046_v14  ;;  %v1336_v61 = vpack.c.bf16 %v1320_v8, %v1320_v8 }
 0x3b6   : > { %v1333_v9 = vpack.c.bf16 %v1317_v5, %v1317_v5  ;;  %v2979_v35 = vpop.eup %2978 }
 0x3b7   : > { %v1319_v19 = vmul.f32 %v2979_v35, %v3410_v20 }
 0x3b8   : > { %2740 = vmatmul.mubr.msk.bf16.vlgmr.msra.gmra.mrb[32].mxu1 %vm375_vm2, %v1333_v9 }
 0x3b9   : > { %2750 = vmatpush3.bf16.msra.mxu1 %v1452_v10  ;;  %2751 = vmatprep.mubr.msk.bf16.mxu1 %vm3047_vm1, %v3046_v14  ;;  %v1335_v62 = vpack.c.bf16 %v1319_v19, %v1319_v19 }
 0x3ba   : > { %2070 = vrot.lane.b32.xlu1 %v3196_v56, %s3050_s11  ;;  %2761 = vmatprep.subr.bf16.mxu1 %v3046_v14  ;;  %v1548_v56 = vsel %vm1354_vm3, %v3380_v0, 0 }
 0x3bb   : > { %2758 = vmatmul.mubr.msk.bf16.vlgmr.msra.gmra.mrb[40].mxu0 %vm375_vm2, %v1336_v61 }
 0x3bc   : > { %2768 = vmatpush3.bf16.msra.mxu0 %v1596_v22  ;;  %2769 = vmatprep.mubr.msk.bf16.mxu0 %vm3047_vm1, %v3046_v14 }
 0x3bd   : > { %2779 = vmatprep.subr.bf16.mxu0 %v3046_v14 }
 0x3be   : > { %2022 = vrot.lane.b32.xlu0 %v3194_v55, %s3050_s11 }
 0x3c0   : > { %2752 = vmatmul.mubr.msk.bf16.vlgmr.msra.gmra.mrb[36].mxu1 %vm375_vm2, %v1335_v62  ;;  %v2126_v62 = vld [vmem:[%s3657_s2] sm:$0xf] }
 0x3c1   : > { %2762 = vmatpush3.bf16.msra.mxu1 %v1548_v56  ;;  %2763 = vmatprep.mubr.msk.bf16.mxu1 %vm3047_vm1, %v3046_v14 }
 0x3c2   : > { %2773 = vmatprep.subr.bf16.mxu1 %v3046_v14 }
 0x3e4   : > { %v1270_v1 = vpop.xlane.xlu0 %1269 }
 0x3e5   : > { %2980 = vrcp.f32 %v1270_v1  ;;  %v1267_v20 = vpop.xlane.xlu1 %1266 }
 0x3e6   : > { %2982 = vrcp.f32 %v1267_v20 }
 0x3ec   : > { %v1276_v44 = vpop.xlane.xlu0 %1275 }
 0x3ed   : > { %2984 = vrcp.f32 %v1276_v44  ;;  %v1273_v13 = vpop.xlane.xlu1 %1272  ;;  %v2137_v44 = vsel %vm1354_vm3, %v2126_v62, 0 }
 0x3ee   : > { %2986 = vrcp.f32 %v1273_v13 }
 0x3ef   : > { %v2981_v55 = vpop.eup %2980 }
 0x3f0   : > { %v2983_v16 = vpop.eup %2982  ;;  %v1322_v0 = vmul.f32 %v2981_v55, %v3418_v47 }
 0x3f1   : > { %v1321_v15 = vmul.f32 %v2983_v16, %v3420_v49 }
 0x3f2   : > { %v1338_v18 = vpack.c.bf16 %v1322_v0, %v1322_v0 }
 0x3f3   : > { %v1337_v23 = vpack.c.bf16 %v1321_v15, %v1321_v15 }
 0x3f4   : > { %2770 = vmatmul.mubr.msk.bf16.vlgmr.msra.gmra.mrb[44].mxu0 %vm375_vm2, %v1338_v18  ;;  %v1282_v32 = vpop.xlane.xlu0 %1281 }
 0x3f5   : > { %2780 = vmatpush3.bf16.msra.mxu0 %v1692_v33  ;;  %2988 = vrcp.f32 %v1282_v32  ;;  %2764 = vmatmul.mubr.msk.bf16.vlgmr.msra.gmra.mrb[40].mxu1 %vm375_vm2, %v1337_v23  ;;  %v1279_v24 = vpop.xlane.xlu1 %1278 }
 0x3f6   : > { %2774 = vmatpush3.bf16.msra.mxu1 %v1644_v21  ;;  %2990 = vrcp.f32 %v1279_v24  ;;  %2775 = vmatprep.mubr.msk.bf16.mxu1 %vm3047_vm1, %v3046_v14 }
 0x3f7   : > { %v2985_v47 = vpop.eup %2984  ;;  %2781 = vmatprep.mubr.msk.bf16.mxu0 %vm3047_vm1, %v3046_v14  ;;  %2785 = vmatprep.subr.bf16.mxu1 %v3046_v14 }
 0x3f8   : > { %v2987_v63 = vpop.eup %2986  ;;  %v1324_v49 = vmul.f32 %v2985_v47, %v3428_v57  ;;  %2791 = vmatprep.subr.bf16.mxu0 %v3046_v14 }
 0x3f9   : > { %v1323_v2 = vmul.f32 %v2987_v63, %v3430_v58 }
 0x3fa   : > { %v1340_v25 = vpack.c.bf16 %v1324_v49, %v1324_v49 }
 0x3fb   : > { %v1339_v26 = vpack.c.bf16 %v1323_v2, %v1323_v2 }
 0x3fc   : > { %2782 = vmatmul.mubr.msk.bf16.vlgmr.msra.gmra.mrb[48].mxu0 %vm375_vm2, %v1340_v25  ;;  %v1288_v30 = vpop.xlane.xlu0 %1287 }
 0x3fd   : > { %2792 = vmatpush3.bf16.msra.mxu0 %v1788_v27  ;;  %2992 = vrcp.f32 %v1288_v30  ;;  %2776 = vmatmul.mubr.msk.bf16.vlgmr.msra.gmra.mrb[44].mxu1 %vm375_vm2, %v1339_v26  ;;  %v1285_v57 = vpop.xlane.xlu1 %1284 }
 0x3fe   : > { %2786 = vmatpush3.bf16.msra.mxu1 %v1740_v31  ;;  %2994 = vrcp.f32 %v1285_v57  ;;  %2787 = vmatprep.mubr.msk.bf16.mxu1 %vm3047_vm1, %v3046_v14  ;;  %v2129_v31 = vld [vmem:[%s3657_s2 + $0xc] sm:$0xf] }
 0x3ff   : > { %v2989_v58 = vpop.eup %2988  ;;  %2793 = vmatprep.mubr.msk.bf16.mxu0 %vm3047_vm1, %v3046_v14  ;;  %2797 = vmatprep.subr.bf16.mxu1 %v3046_v14 }
 0x400   : > { %v2991_v34 = vpop.eup %2990  ;;  %v1326_v52 = vmul.f32 %v2989_v58, %v3438_v11  ;;  %2803 = vmatprep.subr.bf16.mxu0 %v3046_v14  ;;  %v1927_v45 = vpop.permute.xlu0 %1926 }
 0x401   : > { %v1325_v4 = vmul.f32 %v2991_v34, %v3440_v12  ;;  %v1975_v46 = vpop.permute.xlu1 %1974  ;;  %v1932_v59 = vsel %vm1354_vm3, %v1927_v45, 0 }
 0x402   : > { %v1342_v36 = vpack.c.bf16 %v1326_v52, %v1326_v52  ;;  %v1980_v53 = vsel %vm1354_vm3, %v1975_v46, 0 }
 0x403   : > { %v1341_v42 = vpack.c.bf16 %v1325_v4, %v1325_v4 }
 0x404   : > { %2794 = vmatmul.mubr.msk.bf16.vlgmr.msra.gmra.mrb[52].mxu0 %vm375_vm2, %v1342_v36 }
 0x405   : > { %2788 = vmatmul.mubr.msk.bf16.vlgmr.msra.gmra.mrb[48].mxu1 %vm375_vm2, %v1341_v42  ;;  %2804 = vmatpush3.bf16.msra.mxu0 %v1884_v41 }
 0x406   : > { %2798 = vmatpush3.bf16.msra.mxu1 %v1836_v39  ;;  %2799 = vmatprep.mubr.msk.bf16.mxu1 %vm3047_vm1, %v3046_v14 }
 0x407   : > { %v2993_v11 = vpop.eup %2992  ;;  %2805 = vmatprep.mubr.msk.bf16.mxu0 %vm3047_vm1, %v3046_v14  ;;  %2809 = vmatprep.subr.bf16.mxu1 %v3046_v14 }
 0x408   : > { %v2995_v12 = vpop.eup %2994  ;;  %v1328_v37 = vmul.f32 %v2993_v11, %v3446_v17  ;;  %2815 = vmatprep.subr.bf16.mxu0 %v3046_v14 }
 0x409   : > { %v1327_v48 = vmul.f32 %v2995_v12, %v3448_v43 }
 0x40a   : > { %v1344_v50 = vpack.c.bf16 %v1328_v37, %v1328_v37 }
 0x40b   : > { %v1343_v51 = vpack.c.bf16 %v1327_v48, %v1327_v48 }
 0x40c   : > { %2806 = vmatmul.mubr.msk.bf16.vlgmr.msra.gmra.mrb[56].mxu0 %vm375_vm2, %v1344_v50  ;;  %v2311_v50 = vsel %vm1354_vm3, %v2129_v31, 0 }
 0x40d   : > { %2800 = vmatmul.mubr.msk.bf16.vlgmr.msra.gmra.mrb[52].mxu1 %vm375_vm2, %v1343_v51  ;;  %2816 = vmatpush3.bf16.msra.mxu0 %v1980_v53 }
 0x40e   : > { %2810 = vmatpush3.bf16.msra.mxu1 %v1932_v59  ;;  %2811 = vmatprep.mubr.msk.bf16.mxu1 %vm3047_vm1, %v3046_v14 }
 0x40f   : > { %2817 = vmatprep.mubr.msk.bf16.mxu0 %vm3047_vm1, %v3046_v14  ;;  %2821 = vmatprep.subr.bf16.mxu1 %v3046_v14 }
 0x410   : > { %2827 = vmatprep.subr.bf16.mxu0 %v3046_v14 }
 0x431   : > { %v1294_v17 = vpop.xlane.xlu0 %1293 }
 0x432   : > { %2996 = vrcp.f32 %v1294_v17  ;;  %v1291_v43 = vpop.xlane.xlu1 %1290 }
 0x433   : > { %2998 = vrcp.f32 %v1291_v43 }
 0x435   : > { %v1300_v60 = vpop.xlane.xlu0 %1299 }
 0x436   : > { %3000 = vrcp.f32 %v1300_v60  ;;  %v1297_v54 = vpop.xlane.xlu1 %1296 }
 0x437   : > { %3002 = vrcp.f32 %v1297_v54 }
 0x439   : > { %v2023_v9 = vpop.permute.xlu0 %2022 }
 0x43a   : > { %v2071_v8 = vpop.permute.xlu1 %2070  ;;  %v2028_v56 = vsel %vm1354_vm3, %v2023_v9, 0 }
 0x43b   : > { %v2076_v22 = vsel %vm1354_vm3, %v2071_v8, 0 }
 0x43c   : > { %v2997_v3 = vpop.eup %2996 }
 0x43d   : > { %v2999_v7 = vpop.eup %2998  ;;  %v1330_v6 = vmul.f32 %v2997_v3, %v3466_v29 }
 0x43e   : > { %v1329_v5 = vmul.f32 %v2999_v7, %v3468_v28 }
 0x43f   : > { %v1346_v35 = vpack.c.bf16 %v1330_v6, %v1330_v6 }
 0x440   : > { %v3001_v10 = vpop.eup %3000  ;;  %v1345_v61 = vpack.c.bf16 %v1329_v5, %v1329_v5 }
 0x441   : > { %v3003_v19 = vpop.eup %3002  ;;  %2818 = vmatmul.mubr.msk.bf16.vlgmr.msra.gmra.mrb[60].mxu0 %vm375_vm2, %v1346_v35  ;;  %v1332_v29 = vmul.f32 %v3001_v10, %v3474_v38  ;;  %v2127_v38 = vld [vmem:[%s3657_s2 + $0x4] sm:$0xf] }
 0x442   : > { %2812 = vmatmul.mubr.msk.bf16.vlgmr.msra.gmra.mrb[56].mxu1 %vm375_vm2, %v1345_v61  ;;  %2828 = vmatpush3.bf16.msra.mxu0 %v2076_v22  ;;  %v1331_v28 = vmul.f32 %v3003_v19, %v3478_v40  ;;  %v2195_v40 = vsel %vm1354_vm3, %v2127_v38, 0 }
 0x443   : > { %2822 = vmatpush3.bf16.msra.mxu1 %v2028_v56  ;;  %2823 = vmatprep.mubr.msk.bf16.mxu1 %vm3047_vm1, %v3046_v14  ;;  %v1348_v1 = vpack.c.bf16 %v1332_v29, %v1332_v29 }
 0x444   : > { %2829 = vmatprep.mubr.msk.bf16.mxu0 %vm3047_vm1, %v3046_v14  ;;  %2857 = vmatprep.subr.msk.bf16.mxu1 %vm1354_vm3, %v2126_v62  ;;  %v1347_v20 = vpack.c.bf16 %v1331_v28, %v1331_v28  ;;  %v2128_v14 = vld [vmem:[%s3657_s2 + $0x8] sm:$0xf] }
 0x445   : > { %2858 = vmatprep.subr.msk.bf16.mxu0 %vm1354_vm3, %v2127_v38  ;;  %v2253_v26 = vsel %vm1354_vm3, %v2128_v14, 0 }
 0x449   : > { %2830 = vmatmul.mubr.msk.bf16.vlgmr.msra.gmra.mrb[64].mxu0 %vm375_vm2, %v1348_v1 }
 0x44a   : > { %2824 = vmatmul.mubr.msk.bf16.vlgmr.msra.gmra.mrb[60].mxu1 %vm375_vm2, %v1347_v20  ;;  %2840 = vmatpush3.bf16.msra.mxu0 %v2195_v40 }
 0x44b   : > { %2834 = vmatpush3.bf16.msra.mxu1 %v2137_v44  ;;  %2860 = vmatprep.subr.msk.bf16.mxu0 %vm1354_vm3, %v2129_v31 }
 0x44c   : > { %2859 = vmatprep.subr.msk.bf16.mxu1 %vm1354_vm3, %v2128_v14 }
 0x486   : > { %v1440_v13 = vpop.f32.mrb[36].mxu0 }
 0x487   : > { %v2747_v55 = vpop.f32.mrb[37].mxu0 }
 0x488   : > { %v1443_v16 = vpop.f32.mrb[38].mxu0 }
 0x489   : > { %v2748_v0 = vpop.f32.mrb[39].mxu0 }
 0x48b   : > { %v1392_v15 = vpop.f32.mrb[32].mxu1 }
 0x48c   : > { %v2118_v18 = vpack.c.bf16 %v1440_v13, %v1392_v15  ;;  %v2741_v23 = vpop.f32.mrb[33].mxu1 }
 0x48d   : > { %v1395_v33 = vpop.f32.mrb[34].mxu1 }
 0x48e   : > { %v2742_v32 = vpop.f32.mrb[35].mxu1  ;;  %2835 = vmatprep.mubr.msk.bf16.mxu1 %vm375_vm2, %v2118_v18  ;;  %v1536_v21 = vpop.f32.mrb[40].mxu0 }
 0x48f   : > { %v2759_v24 = vpop.f32.mrb[41].mxu0 }
 0x490   : > { %v1539_v47 = vpop.f32.mrb[42].mxu0 }
 0x491   : > { %v2760_v63 = vpop.f32.mrb[43].mxu0 }
 0x493   : > { %v1488_v49 = vpop.f32.mrb[36].mxu1 }
 0x494   : > { %v2119_v2 = vpack.c.bf16 %v1536_v21, %v1488_v49  ;;  %v2753_v25 = vpop.f32.mrb[37].mxu1 }
 0x495   : > { %v1491_v27 = vpop.f32.mrb[38].mxu1 }
 0x496   : > { %v2754_v30 = vpop.f32.mrb[39].mxu1  ;;  %2836 = vmatmul.mubr.msk.bf16.vlgmr.msra.gmra.mrb[64].mxu1 %vm375_vm2, %v2119_v2 }
 0x497   : > { %2846 = vmatpush3.bf16.msra.mxu1 %v2253_v26 }
 0x4c7   : > { %v1632_v57 = vpop.f32.mrb[44].mxu0 }
 0x4c8   : > { %v1584_v58 = vpop.f32.mrb[40].mxu1  ;;  %v2771_v34 = vpop.f32.mrb[45].mxu0 }
 0x4c9   : > { %v2120_v52 = vpack.c.bf16 %v1632_v57, %v1584_v58  ;;  %v2765_v4 = vpop.f32.mrb[41].mxu1  ;;  %v1635_v36 = vpop.f32.mrb[46].mxu0 }
 0x4ca   : > { %v1587_v42 = vpop.f32.mrb[42].mxu1  ;;  %v2772_v41 = vpop.f32.mrb[47].mxu0 }
 0x4cb   : > { %v2766_v39 = vpop.f32.mrb[43].mxu1  ;;  %2841 = vmatprep.mubr.msk.bf16.mxu0 %vm375_vm2, %v2120_v52 }
 0x4cf   : > { %v1728_v11 = vpop.f32.mrb[48].mxu0 }
 0x4d0   : > { %v1680_v12 = vpop.f32.mrb[44].mxu1  ;;  %v2783_v37 = vpop.f32.mrb[49].mxu0 }
 0x4d1   : > { %v2121_v48 = vpack.c.bf16 %v1728_v11, %v1680_v12  ;;  %v2777_v46 = vpop.f32.mrb[45].mxu1  ;;  %v1731_v45 = vpop.f32.mrb[50].mxu0 }
 0x4d2   : > { %v1683_v51 = vpop.f32.mrb[46].mxu1  ;;  %v2784_v53 = vpop.f32.mrb[51].mxu0 }
 0x4d3   : > { %v2778_v59 = vpop.f32.mrb[47].mxu1  ;;  %2842 = vmatmul.mubr.msk.bf16.vlgmr.msra.gmra.mrb[68].mxu0 %vm375_vm2, %v2121_v48 }
 0x4d4   : > { %2852 = vmatpush3.bf16.msra.mxu0 %v2311_v50 }
 0x4d7   : > { %v1824_v17 = vpop.f32.mrb[52].mxu0 }
 0x4d8   : > { %v1776_v43 = vpop.f32.mrb[48].mxu1  ;;  %v2795_v60 = vpop.f32.mrb[53].mxu0 }
 0x4d9   : > { %v2122_v54 = vpack.c.bf16 %v1824_v17, %v1776_v43  ;;  %v2789_v3 = vpop.f32.mrb[49].mxu1  ;;  %v1827_v7 = vpop.f32.mrb[54].mxu0 }
 0x4da   : > { %v1779_v6 = vpop.f32.mrb[50].mxu1  ;;  %v2796_v5 = vpop.f32.mrb[55].mxu0 }
 0x4db   : > { %v2790_v8 = vpop.f32.mrb[51].mxu1  ;;  %2847 = vmatprep.mubr.msk.bf16.mxu1 %vm375_vm2, %v2122_v54  ;;  %v2550_v6 = vld [vmem:[%s3658_s3] ss:$0 sm:$0xff] }
 0x4df   : > { %v1920_v9 = vpop.f32.mrb[56].mxu0 }
 0x4e0   : > { %v1872_v35 = vpop.f32.mrb[52].mxu1  ;;  %v2807_v10 = vpop.f32.mrb[57].mxu0 }
 0x4e1   : > { %v2123_v61 = vpack.c.bf16 %v1920_v9, %v1872_v35  ;;  %v2801_v19 = vpop.f32.mrb[53].mxu1  ;;  %v1923_v22 = vpop.f32.mrb[58].mxu0 }
 0x4e2   : > { %v1875_v62 = vpop.f32.mrb[54].mxu1  ;;  %v2808_v56 = vpop.f32.mrb[59].mxu0 }
 0x4e3   : > { %v2802_v29 = vpop.f32.mrb[55].mxu1  ;;  %2848 = vmatmul.mubr.msk.bf16.vlgmr.msra.gmra.mrb[68].mxu1 %vm375_vm2, %v2123_v61 }
 0x514   : > { %v2016_v28 = vpop.f32.mrb[60].mxu0 }
 0x515   : > { %v1968_v1 = vpop.f32.mrb[56].mxu1  ;;  %v2819_v20 = vpop.f32.mrb[61].mxu0 }
 0x516   : > { %v2124_v44 = vpack.c.bf16 %v2016_v28, %v1968_v1  ;;  %v2813_v38 = vpop.f32.mrb[57].mxu1  ;;  %v2019_v40 = vpop.f32.mrb[62].mxu0 }
 0x517   : > { %v1971_v14 = vpop.f32.mrb[58].mxu1  ;;  %v2820_v13 = vpop.f32.mrb[63].mxu0 }
 0x518   : > { %v2814_v55 = vpop.f32.mrb[59].mxu1  ;;  %2853 = vmatprep.mubr.msk.bf16.mxu0 %vm375_vm2, %v2124_v44 }
 0x51c   : > { %v2112_v16 = vpop.f32.mrb[64].mxu0 }
 0x51d   : > { %v2064_v0 = vpop.f32.mrb[60].mxu1  ;;  %v2831_v15 = vpop.f32.mrb[65].mxu0 }
 0x51e   : > { %v2125_v18 = vpack.c.bf16 %v2112_v16, %v2064_v0  ;;  %v2825_v23 = vpop.f32.mrb[61].mxu1  ;;  %v2115_v33 = vpop.f32.mrb[66].mxu0 }
 0x51f   : > { %v2067_v32 = vpop.f32.mrb[62].mxu1  ;;  %v2832_v21 = vpop.f32.mrb[67].mxu0 }
 0x520   : > { %v2826_v24 = vpop.f32.mrb[63].mxu1  ;;  %2854 = vmatmul.mubr.msk.bf16.vlgmr.msra.gmra.mrb[72].mxu0 %vm375_vm2, %v2125_v18 }
 0x569   : > { %v2837_v47 = vpop.f32.mrb[64].mxu1 }
 0x56a   : > { %v2173_v63 = vpop.f32.mrb[65].mxu1  ;;  %v2376_v26 = vsel %vm260_vm0, %v2837_v47, 0.0 }
 0x56b   : > { %v2838_v49 = vpop.f32.mrb[66].mxu1  ;;  %v2362_v31 = vsel %vm260_vm0, %v2173_v63, 0.0 }
 0x56c   : > { %v2176_v2 = vpop.f32.mrb[67].mxu1  ;;  %v2383_v52 = vsel %vm260_vm0, %v2838_v49, 0.0 }
 0x56d   : > { %v2369_v41 = vsel %vm260_vm0, %v2176_v2, 0.0 }
 0x5a6   : > { %v2843_v25 = vpop.f32.mrb[68].mxu0 }
 0x5a7   : > { %v2377_v27 = vsel %vm260_vm0, %v2843_v25, 0.0  ;;  %v2231_v30 = vpop.f32.mrb[69].mxu0 }
 0x5a8   : > { %v2378_v57 = vadd.f32 %v2377_v27, %v2376_v26  ;;  %v2363_v58 = vsel %vm260_vm0, %v2231_v30, 0.0  ;;  %v2844_v34 = vpop.f32.mrb[70].mxu0 }
 0x5a9   : > { %v2364_v4 = vadd.f32 %v2363_v58, %v2362_v31  ;;  %v2384_v36 = vsel %vm260_vm0, %v2844_v34, 0.0  ;;  %v2234_v42 = vpop.f32.mrb[71].mxu0 }
 0x5aa   : > { %v2385_v39 = vadd.f32 %v2384_v36, %v2383_v52  ;;  %v2370_v11 = vsel %vm260_vm0, %v2234_v42, 0.0 }
 0x5ab   : > { %v2371_v12 = vadd.f32 %v2370_v11, %v2369_v41 }
 0x5b6   : > { %v2849_v37 = vpop.f32.mrb[68].mxu1 }
 0x5b7   : > { %v2379_v48 = vsel %vm260_vm0, %v2849_v37, 0.0  ;;  %v2289_v46 = vpop.f32.mrb[69].mxu1 }
 0x5b8   : > { %v2380_v45 = vadd.f32 %v2379_v48, %v2378_v57  ;;  %v2365_v50 = vsel %vm260_vm0, %v2289_v46, 0.0  ;;  %v2850_v51 = vpop.f32.mrb[70].mxu1 }
 0x5b9   : > { %v2366_v53 = vadd.f32 %v2365_v50, %v2364_v4  ;;  %v2386_v59 = vsel %vm260_vm0, %v2850_v51, 0.0  ;;  %v2292_v17 = vpop.f32.mrb[71].mxu1 }
 0x5ba   : > { %v2387_v43 = vadd.f32 %v2386_v59, %v2385_v39  ;;  %v2372_v60 = vsel %vm260_vm0, %v2292_v17, 0.0 }
 0x5bb   : > { %v2373_v54 = vadd.f32 %v2372_v60, %v2371_v12 }
 0x5f3   : > { %v2855_v3 = vpop.f32.mrb[72].mxu0 }
 0x5f4   : > { %v2381_v7 = vsel %vm260_vm0, %v2855_v3, 0.0  ;;  %v2347_v5 = vpop.f32.mrb[73].mxu0 }
 0x5f5   : > { %v2382_v8 = vadd.f32 %v2381_v7, %v2380_v45  ;;  %v2367_v9 = vsel %vm260_vm0, %v2347_v5, 0.0  ;;  %v2856_v35 = vpop.f32.mrb[74].mxu0 }
 0x5f6   : > { %v2368_v10 = vadd.f32 %v2367_v9, %v2366_v53  ;;  %v2388_v61 = vsel %vm260_vm0, %v2856_v35, 0.0  ;;  %v2350_v19 = vpop.f32.mrb[75].mxu0 }
 0x5f7   : > { %v2399_v22 = vadd.f32 %v2550_v6, %v2382_v8  ;;  %v2389_v62 = vadd.f32 %v2388_v61, %v2387_v43  ;;  %v2374_v56 = vsel %vm260_vm0, %v2350_v19, 0.0 }
 0x5f8   : > { %v2397_v29 = vadd.f32 %v2550_v6, %v2368_v10  ;;  %v2375_v28 = vadd.f32 %v2374_v56, %v2373_v54 }
 0x5f9   : > { %2403 = vst.msk [vmem:[%s235_s5 + $0x10] sm:$0xff] %vm260_vm0, %v2399_v22  ;;  %v2400_v1 = vadd.f32 %v2550_v6, %v2389_v62 }
 0x5fa   : > { %2401 = vst.msk [vmem:[%s235_s5] sm:$0xff] %vm260_vm0, %v2397_v29  ;;  %v2398_v20 = vadd.f32 %v2550_v6, %v2375_v28 }
 0x5fb   : > { %2404 = vst.msk [vmem:[%s235_s5 + $0x18] sm:$0xff] %vm260_vm0, %v2400_v1 }
 0x5fc   : > { %2402 = vst.msk [vmem:[%s235_s5 + $0x8] sm:$0xff] %vm260_vm0, %v2398_v20 }
 0x5fd PF: > { %s14_s19 = sadd.s32 1, %s3042_s19   ;;  %s3660_s15 = smov %s3034_s17 }
 0x5fe   : > { %p11_p7 = scmp.ge.s32.totalorder %s14_s19, 6   ;;  %s3661_s16 = smov %s3038_s18 }
 0x5ff   : > { %s3662_s17 = smov %s3665_s20  ;;  %s3663_s18 = smov %s3669_s21 }
 0x600   :  { %13 = sbr.rel (!%p11_p7) target bundleno = 3 (0x3), region = 66 }

</bundles_post_ra>
